<compile_context>
chip_gen: v6e
topology: v6e:2x2x1
jax: 0.10.0
libtpu: 0.0.40
codegen_flags: <defaults>
</compile_context>

<pallas_src>
import jax
import jax.numpy as jnp
from jax import lax
from jax.experimental import pallas as pl
from jax.experimental.pallas import tpu as pltpu


def _dfl_kernel(x_ref, w_ref, o_ref):
    # x_ref: (1, 4, c1, TA)   w_ref: (c1, 1)   o_ref: (1, 4, TA)
    x = x_ref[0].astype(jnp.float32)                 # (4, c1, TA)
    m = jnp.max(x, axis=1, keepdims=True)            # (4, 1, TA)   sublane reduce
    e = jnp.exp(x - m)                               # (4, c1, TA)  EUP
    den = jnp.sum(e, axis=1)                         # (4, TA)
    w = w_ref[...].astype(jnp.float32)               # (c1, 1)
    num = jnp.sum(e * w[None, :, :], axis=1)         # (4, TA)  weighted sum = 1x1 conv
    o_ref[0] = (num / den).astype(o_ref.dtype)


def dfl_forward(x, conv_w, *, block_a=None):
    """x: (b, 4*c1, a) float; conv_w: (c1,) 1x1-conv weight (arange(c1) for DFL)."""
    b, c, a = x.shape
    c1 = conv_w.shape[0]
    assert c == 4 * c1, (c, c1)

    x4 = x.reshape(b, 4, c1, a)                      # free view, no transpose
    w = conv_w.reshape(c1, 1).astype(jnp.float32)

    if block_a is None:
        block_a = min(a, 256)
    if a >= 128:
        block_a = max(128, (min(block_a, a) // 128) * 128)   # lane-dense tiles
    else:
        block_a = a
    grid = (b, pl.cdiv(a, block_a))

    return pl.pallas_call(
        _dfl_kernel,
        out_shape=jax.ShapeDtypeStruct((b, 4, a), x.dtype),
        grid_spec=pltpu.PrefetchScalarGridSpec(
            num_scalar_prefetch=0,
            grid=grid,
            in_specs=[
                pl.BlockSpec((1, 4, c1, block_a), lambda bi, ai: (bi, 0, 0, ai)),
                pl.BlockSpec((c1, 1), lambda bi, ai: (0, 0)),
            ],
            out_specs=pl.BlockSpec((1, 4, block_a), lambda bi, ai: (bi, 0, ai)),
        ),
        compiler_params=pltpu.CompilerParams(
            dimension_semantics=("parallel", "parallel")),
    )(x4, w)


# ---------------------------------------------------------------------------
# Pure-JAX reference (mirrors the PyTorch forward exactly)
# ---------------------------------------------------------------------------
def _ref_dfl(x, conv_w):
    b, c, a = x.shape
    c1 = conv_w.shape[0]
    xt = jnp.transpose(x.reshape(b, 4, c1, a), (0, 2, 1, 3))   # (b, c1, 4, a)
    p = jax.nn.softmax(xt, axis=1)
    return jnp.einsum('bcja,c->bja', p, conv_w)                # (b, 4, a)


if __name__ == "__main__":
    key = jax.random.PRNGKey(0)
    b, c1, a = 2, 17, 1024                  # x: (2, 68, 1024) -- small demo shape
    x = jax.random.normal(key, (b, 4 * c1, a), jnp.float32) * 3.0
    conv_w = jnp.arange(c1, dtype=jnp.float32)   # DFL's frozen 1x1 conv weight

    out = jax.block_until_ready(dfl_forward(x, conv_w))
    assert out.shape == (b, 4, a), out.shape

    ref = jax.block_until_ready(_ref_dfl(x, conv_w))
    assert jnp.allclose(out, ref, rtol=1e-5, atol=1e-5), \
        float(jnp.max(jnp.abs(out - ref)))

    print("KERNEL_OK")
</pallas_src>

<mosaic_0001>
module attributes {stable_mosaic.version = 11 : i64} {
  func.func @_dfl_kernel(%arg0: i32, %arg1: i32, %arg2: memref<1x4x17x256xf32, #tpu.memory_space<vmem>>, %arg3: memref<17x1xf32, #tpu.memory_space<vmem>>, %arg4: memref<1x4x256xf32, #tpu.memory_space<vmem>>) attributes {dimension_semantics = [#tpu.dimension_semantics<parallel>, #tpu.dimension_semantics<parallel>], iteration_bounds = array<i64: 2, 4>, scalar_prefetch = 0 : i64, scratch_operands = 0 : i64, tpu.core_type = #tpu.core_type<tc>, window_params = [{transform_indices = @transform_0, window_bounds = array<i64: 1, 4, 17, 256>}, {pipeline_mode = #tpu.pipeline_mode<synchronous>, transform_indices = @transform_1, window_bounds = array<i64: 17, 1>}, {transform_indices = @transform_2, window_bounds = array<i64: 1, 4, 256>}]} {
    %c0 = arith.constant 0 : index
    %c0_0 = arith.constant 0 : index
    %c0_1 = arith.constant 0 : index
    %c0_2 = arith.constant 0 : index
    %0 = vector.load %arg2[%c0, %c0_0, %c0_1, %c0_2] : memref<1x4x17x256xf32, #tpu.memory_space<vmem>>, vector<1x4x17x256xf32>
    %1 = vector.shape_cast %0 : vector<1x4x17x256xf32> to vector<4x17x256xf32>
    %cst = arith.constant dense<0xFF800000> : vector<4x256xf32>
    %2 = vector.multi_reduction <maximumf>, %1, %cst [1] : vector<4x17x256xf32> to vector<4x256xf32>
    %3 = vector.shape_cast %2 : vector<4x256xf32> to vector<4x1x256xf32>
    %4 = vector.broadcast %3 : vector<4x1x256xf32> to vector<4x17x256xf32>
    %5 = arith.subf %1, %4 : vector<4x17x256xf32>
    %6 = math.exp %5 : vector<4x17x256xf32>
    %cst_3 = arith.constant dense<0.000000e+00> : vector<4x256xf32>
    %7 = vector.multi_reduction <add>, %6, %cst_3 [1] : vector<4x17x256xf32> to vector<4x256xf32>
    %c0_4 = arith.constant 0 : index
    %c0_5 = arith.constant 0 : index
    %8 = vector.load %arg3[%c0_4, %c0_5] : memref<17x1xf32, #tpu.memory_space<vmem>>, vector<17x1xf32>
    %9 = vector.shape_cast %8 : vector<17x1xf32> to vector<1x17x1xf32>
    %10 = vector.broadcast %9 : vector<1x17x1xf32> to vector<4x17x256xf32>
    %11 = arith.mulf %6, %10 : vector<4x17x256xf32>
    %cst_6 = arith.constant dense<0.000000e+00> : vector<4x256xf32>
    %12 = vector.multi_reduction <add>, %11, %cst_6 [1] : vector<4x17x256xf32> to vector<4x256xf32>
    %13 = arith.divf %12, %7 : vector<4x256xf32>
    %c0_7 = arith.constant 0 : index
    %c0_8 = arith.constant 0 : index
    %c0_9 = arith.constant 0 : index
    %14 = vector.load %arg4[%c0_7, %c0_8, %c0_9] : memref<1x4x256xf32, #tpu.memory_space<vmem>>, vector<1x4x256xf32>
    %15 = vector.shape_cast %14 : vector<1x4x256xf32> to vector<4x256xf32>
    %16 = vector.shape_cast %13 : vector<4x256xf32> to vector<1x4x256xf32>
    tpu.vector_store %arg4[%c0_7, %c0_8, %c0_9], %16 {strides = array<i32>} : memref<1x4x256xf32, #tpu.memory_space<vmem>>, vector<1x4x256xf32>,
    return
  }
  func.func @transform_0(%arg0: i32, %arg1: i32) -> (i32, i32, i32, i32) {
    %c0_i32 = arith.constant 0 : i32
    %c0_i32_0 = arith.constant 0 : i32
    %c0_i32_1 = arith.constant 0 : i32
    return %arg0, %c0_i32, %c0_i32_0, %arg1 : i32, i32, i32, i32
  }
  func.func @transform_1(%arg0: i32, %arg1: i32) -> (i32, i32) {
    %c0_i32 = arith.constant 0 : i32
    %c0_i32_0 = arith.constant 0 : i32
    %c0_i32_1 = arith.constant 0 : i32
    return %c0_i32, %c0_i32_0 : i32, i32
  }
  func.func @transform_2(%arg0: i32, %arg1: i32) -> (i32, i32, i32) {
    %c0_i32 = arith.constant 0 : i32
    %c0_i32_0 = arith.constant 0 : i32
    return %arg0, %c0_i32, %arg1 : i32, i32, i32
  }
}

</mosaic_0001>

<bundles_post_ra>
// kernel: tpu_custom_call.1
= control target key start
LH: loop header
LB: loop body
LE: loop exit
PB: predicated region body
PF: predicated region fallthrough
CT: control target
= control target key end

     0   :  { %7 = vsyncpa [#allocation4], 0  ;;  %s1459_s0 = inlined_call_operand.vmem [shape: f32[2,4,17,1024], index: 0, kind: input, shape index: {}]   ;;  %s1460_s1 = inlined_call_operand.vmem [shape: f32[17,1], index: 1, kind: input, shape index: {}]   ;;  %s1461_s2 = inlined_call_operand.hbm [shape: f32[2,4,1024], index: 2, kind: output, shape index: {}]  }
   0x1   :  { %9 = vsyncpa [#allocation4 + $0x1], 0  ;;  %s993_s9 = smov 0   ;;  %s995_s10 = smov 0  }
   0x2   :  { %s997_s11 = smov 0   ;;  %s999_s12 = smov 0  }
   0x3   :  { %s1001_s13 = smov 0   ;;  %s1003_s14 = smov 0  }
   0x4   :  { %s1005_s15 = smov 0   ;;  %s1007_s16 = smov 0  }
   0x5 LB: > { %s727_s17 = sadd.s32 4294967295, %s974_s16   ;;  %s728_s18 = sadd.s32 4294967294, %s974_s16   ;;  %s974_s16 = sphi %s1007_s16, %s15_s16   ;;  %s970_s15 = sphi %s1005_s15, %s1471_s15   ;;  %s966_s14 = sphi %s1003_s14, %s1470_s14   ;;  %s962_s13 = sphi %s1001_s13, %s1469_s13   ;;  %s958_s12 = sphi %s999_s12, %s1468_s12   ;;  %s954_s11 = sphi %s997_s11, %s1467_s11   ;;  %s950_s10 = sphi %s995_s10, %s1466_s10   ;;  %s946_s9 = sphi %s993_s9, %s1465_s9  }
   0x6   : > { %s24_s19 = sadd.s32 1, %s966_s14  ;;  %s27_s20 = sadd.s32 1, %s970_s15 }
   0x7   : > { %p25_p0 = scmp.ge.s32.totalorder %s24_s19, 4  ;;  %p43_p1 = scmp.ne.s32.totalorder %s954_s11, %s950_s10 }
   0x8   : > { %p44_p2 = scmp.eq.s32.totalorder %s974_s16, 0  ;;  %p96_p5 = scmp.eq.s32.totalorder %s727_s17, 7 }
   0x9   : > { %s1473_s19 = smov (%p25_p0, %s24_s19), 0  ;;  %s1475_s20 = smov (!%p25_p0, %s27_s20), %s970_s15 }
   0xa   : > { %s32_s21 = ssub.s32 %s966_s14, %s1473_s19  ;;  %p1045_p3 = por %p44_p2, %p43_p1 }
   0xb   : > { %p29_p4 = scmp.ge.s32.totalorder %s1475_s20, 2  ;;  %p101_p6 = scmp.ne.s32.totalorder %s950_s10, %s946_s9 }
   0xc   : > { %p102_p7 = scmp.eq.s32.totalorder %s728_s18, 7  ;;  %p1053_p8 = por %p96_p5, %p43_p1 }
   0xd   : > { %s1477_s20 = smov (%p29_p4, %s1475_s20), 0  ;;  %s36_s27 = sadd.s32 1, %s954_s11 }
   0xe   : > { %p1057_p9 = por %p102_p7, %p101_p6  ;;  %s31_s25 = ssub.s32 %s970_s15, %s1477_s20 }
   0xf   : > { %s33_s26 = sor.u32 %s32_s21, %s31_s25  ;;  %p730_p11 = scmp.ge.s32.totalorder %s974_s16, 8 }
  0x10   : > { %p34_p10 = scmp.eq.s32.totalorder %s33_s26, 0 }
  0x11   : > { %121 = sbr.rel (%p730_p11) target bundleno = 42 (0x2a), region = 20 }
  0x12   : > { %s1065_s28 = scalar_select %p34_p10, %s954_s11, %s36_s27  }
  0x16   : > { %124 = sbr.rel (!%p1045_p3) target bundleno = 42 (0x2a), region = 24  ;;  %s126_s29 = sand.u32 (%p1045_p3), 1, %s954_s11  }
  0x17   : > { %s741_s30 = smul.u32 (%p1045_p3), 192, %s126_s29  ;;  %s731_s3 = sshll.u32 (%p1045_p3), %s966_s14, 1 }
  0x18   : > { %s742_s4 = smul.u32 (%p1045_p3), 96, %s970_s15 }
  0x19   : > { %s1081_s18 = scalar_lea.vmem (%p1045_p3), [#allocation2], %s741_s30 }
  0x1a   : > { %s131_s5 = sadd.s32 (%p1045_p3), %s742_s4, %s731_s3 }
  0x1b   : > { %s732_s6 = sshll.u32 %s131_s5, 3 }
  0x1c   : > { %s1076_s17 = scalar_lea.vmem %s1459_s0, %s732_s6 }
  0x1d   : > { %v146_v0 = vld [vmem:[%s1076_s17] sm:$0xff]  ;;  %v148_v1 = vld [vmem:[%s1076_s17 + $0x8] sm:$0xff] }
  0x1e   : > { %v150_v2 = vld [vmem:[%s1076_s17 + $0x40] sm:$0xff]  ;;  %147 = vst [vmem:[%s1081_s18] sm:$0xff] %v146_v0  ;;  %149 = vst [vmem:[%s1081_s18 + $0x8] sm:$0xff] %v148_v1  ;;  %v152_v3 = vld [vmem:[%s1076_s17 + $0x48] sm:$0xff] }
  0x1f   : > { %151 = vst [vmem:[%s1081_s18 + $0x10] sm:$0xff] %v150_v2  ;;  %v154_v4 = vld [vmem:[%s1076_s17 + $0x80] sm:$0xff]  ;;  %v156_v5 = vld [vmem:[%s1076_s17 + $0x88] sm:$0xff]  ;;  %153 = vst [vmem:[%s1081_s18 + $0x18] sm:$0xff] %v152_v3 }
  0x20   : > { %155 = vst [vmem:[%s1081_s18 + $0x20] sm:$0xff] %v154_v4  ;;  %157 = vst [vmem:[%s1081_s18 + $0x28] sm:$0xff] %v156_v5  ;;  %v158_v6 = vld [vmem:[%s1076_s17 + $0xc0] sm:$0xff]  ;;  %v160_v7 = vld [vmem:[%s1076_s17 + $0xc8] sm:$0xff] }
  0x21   : > { %v162_v8 = vld [vmem:[%s1076_s17 + $0x100] sm:$0xff]  ;;  %159 = vst [vmem:[%s1081_s18 + $0x30] sm:$0xff] %v158_v6  ;;  %161 = vst [vmem:[%s1081_s18 + $0x38] sm:$0xff] %v160_v7  ;;  %v164_v9 = vld [vmem:[%s1076_s17 + $0x108] sm:$0xff] }
  0x22   : > { %163 = vst [vmem:[%s1081_s18 + $0x40] sm:$0xff] %v162_v8  ;;  %v166_v10 = vld [vmem:[%s1076_s17 + $0x140] sm:$0xff]  ;;  %v168_v11 = vld [vmem:[%s1076_s17 + $0x148] sm:$0xff]  ;;  %165 = vst [vmem:[%s1081_s18 + $0x48] sm:$0xff] %v164_v9 }
  0x23   : > { %167 = vst [vmem:[%s1081_s18 + $0x50] sm:$0xff] %v166_v10  ;;  %169 = vst [vmem:[%s1081_s18 + $0x58] sm:$0xff] %v168_v11  ;;  %v170_v12 = vld [vmem:[%s1076_s17 + $0x180] sm:$0xff]  ;;  %v172_v13 = vld [vmem:[%s1076_s17 + $0x188] sm:$0xff] }
  0x24   : > { %v174_v14 = vld [vmem:[%s1076_s17 + $0x1c0] sm:$0xff]  ;;  %171 = vst [vmem:[%s1081_s18 + $0x60] sm:$0xff] %v170_v12  ;;  %173 = vst [vmem:[%s1081_s18 + $0x68] sm:$0xff] %v172_v13  ;;  %v176_v15 = vld [vmem:[%s1076_s17 + $0x1c8] sm:$0xff] }
  0x25   : > { %175 = vst [vmem:[%s1081_s18 + $0x70] sm:$0xff] %v174_v14  ;;  %v178_v16 = vld [vmem:[%s1076_s17 + $0x200] sm:$0xff]  ;;  %v180_v17 = vld [vmem:[%s1076_s17 + $0x208] sm:$0xff]  ;;  %177 = vst [vmem:[%s1081_s18 + $0x78] sm:$0xff] %v176_v15 }
  0x26   : > { %179 = vst [vmem:[%s1081_s18 + $0x80] sm:$0xff] %v178_v16  ;;  %181 = vst [vmem:[%s1081_s18 + $0x88] sm:$0xff] %v180_v17  ;;  %v182_v18 = vld [vmem:[%s1076_s17 + $0x240] sm:$0xff]  ;;  %v184_v19 = vld [vmem:[%s1076_s17 + $0x248] sm:$0xff] }
  0x27   : > { %v186_v20 = vld [vmem:[%s1076_s17 + $0x280] sm:$0xff]  ;;  %183 = vst [vmem:[%s1081_s18 + $0x90] sm:$0xff] %v182_v18  ;;  %185 = vst [vmem:[%s1081_s18 + $0x98] sm:$0xff] %v184_v19  ;;  %v188_v21 = vld [vmem:[%s1076_s17 + $0x288] sm:$0xff] }
  0x28   : > { %187 = vst [vmem:[%s1081_s18 + $0xa0] sm:$0xff] %v186_v20  ;;  %v190_v22 = vld [vmem:[%s1076_s17 + $0x2c0] sm:$0xff]  ;;  %v192_v23 = vld [vmem:[%s1076_s17 + $0x2c8] sm:$0xff]  ;;  %189 = vst [vmem:[%s1081_s18 + $0xa8] sm:$0xff] %v188_v21 }
  0x29   : > { %191 = vst [vmem:[%s1081_s18 + $0xb0] sm:$0xff] %v190_v22  ;;  %193 = vst [vmem:[%s1081_s18 + $0xb8] sm:$0xff] %v192_v23 }
  0x2a PF: > { %p733_p12 = scmp.ge.s32.totalorder %s974_s16, 1  ;;  %p198_p13 = scmp.lt.s32.totalorder %s974_s16, 9 }
  0x2c   : > { %p199_p0 = pnand %p733_p12, %p198_p13 }
  0x2d   : > { %s1137_s27 = sand.u32 (!%p199_p0), 1, %s950_s10   ;;  %s736_s6 = sshll.u32 (!%p199_p0), %s958_s12, 1 }
  0x2e   : > { %202 = sbr.rel (%p199_p0) target bundleno = 229 (0xe5), region = 47  ;;  %s734_s5 = sshll.u32 (!%p199_p0), %s1137_s27, 3 }
  0x2f   : > { %s743_s3 = smul.u32 (!%p199_p0), 192, %s1137_s27  ;;  %s737_s7 = sshll.u32 (!%p199_p0), %s962_s13, 3 }
  0x30   : > { %s641_s8 = sadd.s32 (!%p199_p0), %s737_s7, %s736_s6  ;;  %s225_s18 = scalar_lea.vmem (!%p199_p0), [#allocation3], %s734_s5 }
  0x31   : > { %s1143_s4 = scalar_lea.vmem (!%p199_p0), [#allocation2], %s743_s3  ;;  %s738_s17 = sshll.u32 (!%p199_p0), %s641_s8, 6 }
  0x32   : > { %s645_s12 = sshll.u32 (!%p199_p0), %s225_s18, 4  ;;  %s1412_s22 = scalar_lea.hbm (!%p199_p0), %s1461_s2, %s738_s17  ;;  %s646_s12 = int_to_ptr.vmem [resolvable:$true] %s645_s12 }
  0x33   : > { %v469_v24 = vld [vmem:[%s1460_s1] sm:$0xff]  ;;  %v471_v25 = vld [vmem:[%s1460_s1 + $0x10] sm:$0x1]  ;;  %v976_v26 = vmov 0   ;;  %v470_v27 = vld [vmem:[%s1460_s1 + $0x8] sm:$0xff]  ;;  %vm253_vm0 = vcmask 1040384  }
  0x34   : > { %816 = vset.pattern.permute.xlu0 %v976_v26  ;;  %817 = vset.pattern.permute.xlu1 %v976_v26  ;;  %v1146_v28 = vld [vmem:[%s1143_s4] sm:$0xff]  ;;  %v1149_v29 = vld [vmem:[%s1143_s4 + $0x10] sm:$0xff]  ;;  %v1152_v30 = vld [vmem:[%s1143_s4 + $0x8] sm:$0xff]  ;;  %vm612_vm1 = vcmask 1041409   ;;  %vm614_vm2 = vcmask 1045509   ;;  %vm617_vm3 = vcmask 1042434  }
  0x35   : > { %474 = vperm.xlu0 %816, %v469_v24   ;;  %484 = vperm.xlu1 %817, %v471_v25   ;;  %v1155_v31 = vld [vmem:[%s1143_s4 + $0x18] sm:$0xff]  ;;  %v1158_v32 = vld [vmem:[%s1143_s4 + $0x20] sm:$0x1]  ;;  %v1161_v33 = vld [vmem:[%s1143_s4 + $0x28] sm:$0x1]  ;;  %v252_v34 = vmax.f32 %v1146_v28, %v1149_v29  ;;  %vm619_vm4 = vcmask 1046534  }
  0x36   : > { %v254_v35 = vsel %vm253_vm0, %v1158_v32, -inf  ;;  %v262_v36 = vmax.f32 %v1152_v30, %v1155_v31  ;;  %v263_v37 = vsel %vm253_vm0, %v1161_v33, -inf  ;;  %v1172_v38 = vld [vmem:[%s1143_s4 + $0x30] sm:$0xff]  ;;  %v1175_v39 = vld [vmem:[%s1143_s4 + $0x40] sm:$0xff]  ;;  %v1178_v40 = vld [vmem:[%s1143_s4 + $0x38] sm:$0xff]  ;;  %vm622_vm5 = vcmask 1043459  }
  0x37   : > { %v1181_v41 = vld [vmem:[%s1143_s4 + $0x48] sm:$0xff]  ;;  %v1184_v42 = vld [vmem:[%s1143_s4 + $0x50] sm:$0x1]  ;;  %v255_v43 = vmax.f32 %v252_v34, %v254_v35  ;;  %v1187_v44 = vld [vmem:[%s1143_s4 + $0x58] sm:$0x1]  ;;  %v271_v46 = vmax.f32 %v1172_v38, %v1175_v39  ;;  %vm624_vm6 = vcmask 1047559  }
  0x38   : > { %v264_v45 = vmax.f32 %v262_v36, %v263_v37  ;;  %v272_v47 = vsel %vm253_vm0, %v1184_v42, -inf  ;;  %v280_v48 = vmax.f32 %v1178_v40, %v1181_v41  ;;  %v281_v50 = vsel %vm253_vm0, %v1187_v44, -inf  ;;  %v1198_v51 = vld [vmem:[%s1143_s4 + $0x60] sm:$0xff]  ;;  %v1201_v52 = vld [vmem:[%s1143_s4 + $0x70] sm:$0xff]  ;;  %v1204_v54 = vld [vmem:[%s1143_s4 + $0x68] sm:$0xff]  ;;  %s629_s25 = scalar_lea.sflag [#allocation4], %s1137_s27 }
  0x39   : > { %479 = vperm.xlu0 %816, %v470_v27   ;;  %v256_v49 = vrot.slane %v255_v43, 4  ;;  %v1207_v55 = vld [vmem:[%s1143_s4 + $0x78] sm:$0xff]  ;;  %v1210_v56 = vld [vmem:[%s1143_s4 + $0x80] sm:$0x1]  ;;  %v273_v57 = vmax.f32 %v271_v46, %v272_v47  ;;  %v1213_v58 = vld [vmem:[%s1143_s4 + $0x88] sm:$0x1]  ;;  %v289_v61 = vmax.f32 %v1198_v51, %v1201_v52 }
  0x3a   : > { %v265_v53 = vrot.slane %v264_v45, 4  ;;  %v282_v59 = vmax.f32 %v280_v48, %v281_v50  ;;  %v290_v63 = vsel %vm253_vm0, %v1210_v56, -inf  ;;  %v298_v0 = vmax.f32 %v1204_v54, %v1207_v55  ;;  %v1224_v3 = vld [vmem:[%s1143_s4 + $0x90] sm:$0xff]  ;;  %v1227_v4 = vld [vmem:[%s1143_s4 + $0xa0] sm:$0xff]  ;;  %v1230_v6 = vld [vmem:[%s1143_s4 + $0x98] sm:$0xff]  ;;  %s882_s26 = scalar_lea.vmem %s646_s12, 128 }
  0x3b   : > { %v257_v60 = vmax.f32 %v255_v43, %v256_v49  ;;  %v274_v1 = vrot.slane %v273_v57, 4  ;;  %v299_v2 = vsel %vm253_vm0, %v1213_v58, -inf  ;;  %v1233_v7 = vld [vmem:[%s1143_s4 + $0xa8] sm:$0xff]  ;;  %v1236_v8 = vld [vmem:[%s1143_s4 + $0xb0] sm:$0x1]  ;;  %v291_v10 = vmax.f32 %v289_v61, %v290_v63  ;;  %p883_p1 = scmp.ne.s32.totalorder %s646_s12, %s882_s26  ;;  %s977_s29 = smov [#allocation3]  }
  0x3c   : > { %v266_v62 = vmax.f32 %v264_v45, %v265_v53  ;;  %v283_v5 = vrot.slane %v282_v59, 4  ;;  %v1239_v11 = vld [vmem:[%s1143_s4 + $0xb8] sm:$0x1]  ;;  %v300_v13 = vmax.f32 %v298_v0, %v299_v2  ;;  %v307_v15 = vmax.f32 %v1224_v3, %v1227_v4  ;;  %s886_s30 = sshll.u32 %s977_s29, 4  ;;  %s887_s30 = int_to_ptr.vmem [resolvable:$false] %s886_s30 }
  0x3d   : > { %v258_v9 = vrot.slane %v257_v60, 2  ;;  %v275_v14 = vmax.f32 %v273_v57, %v274_v1  ;;  %v308_v17 = vsel %vm253_vm0, %v1236_v8, -inf  ;;  %v316_v18 = vmax.f32 %v1230_v6, %v1233_v7  ;;  %p884_p2 = pnand %p883_p1, %p1053_p8  ;;  %s888_s3 = scalar_lea.vmem %s887_s30, 256 }
  0x3e   : > { %v267_v12 = vrot.slane %v266_v62, 2  ;;  %v284_v16 = vmax.f32 %v282_v59, %v283_v5  ;;  %v292_v20 = vrot.slane %v291_v10, 4  ;;  %v317_v21 = vsel %vm253_vm0, %v1239_v11, -inf  ;;  %p889_p4 = scmp.lt.s32.totalorder %s646_s12, %s887_s30  ;;  %p890_p5 = scmp.lt.s32.totalorder %s888_s3, %s882_s26 }
  0x3f   : > { %v259_v19 = vmax.f32 %v257_v60, %v258_v9  ;;  %v301_v23 = vrot.slane %v300_v13, 4  ;;  %v276_v24 = vrot.slane %v275_v14, 2  ;;  %v309_v25 = vmax.f32 %v307_v15, %v308_v17  ;;  %p885_p3 = pneg %p884_p2 }
  0x40   : > { %v268_v22 = vmax.f32 %v266_v62, %v267_v12  ;;  %v285_v26 = vrot.slane %v284_v16, 2  ;;  %v318_v27 = vmax.f32 %v316_v18, %v317_v21  ;;  %v293_v35 = vmax.f32 %v291_v10, %v292_v20  ;;  %p891_p6 = por %p890_p5, %p889_p4 }
  0x41   : > { %v260_v34 = vrot.slane %v259_v19, 1  ;;  %v302_v37 = vmax.f32 %v300_v13, %v301_v23  ;;  %v277_v43 = vmax.f32 %v275_v14, %v276_v24  ;;  %v310_v45 = vrot.slane %v309_v25, 4 }
  0x42   : > { %v269_v36 = vrot.slane %v268_v22, 1  ;;  %v286_v46 = vmax.f32 %v284_v16, %v285_v26  ;;  %v319_v47 = vrot.slane %v318_v27, 4  ;;  %v294_v49 = vrot.slane %v293_v35, 2  ;;  %p892_p7 = pnand %p891_p6, %p885_p3 }
  0x43   : > { %v261_v48 = vmax.f32 %v259_v19, %v260_v34  ;;  %v303_v53 = vrot.slane %v302_v37, 2  ;;  %v278_v57 = vrot.slane %v277_v43, 1  ;;  %v311_v59 = vmax.f32 %v309_v25, %v310_v45 }
  0x44   : > { %v270_v50 = vmax.f32 %v268_v22, %v269_v36  ;;  %v287_v60 = vrot.slane %v286_v46, 1  ;;  %v320_v61 = vmax.f32 %v318_v27, %v319_v47  ;;  %v295_v62 = vmax.f32 %v293_v35, %v294_v49 }
  0x45   : > { %v325_v63 = vsub.f32 %v1146_v28, %v261_v48  ;;  %v304_v0 = vmax.f32 %v302_v37, %v303_v53  ;;  %v279_v2 = vmax.f32 %v277_v43, %v278_v57  ;;  %v312_v5 = vrot.slane %v311_v59, 2 }
  0x46   : > { %v326_v1 = vsub.f32 %v1152_v30, %v270_v50  ;;  %v327_v9 = vsub.f32 %v1149_v29, %v261_v48  ;;  %v288_v10 = vmax.f32 %v286_v46, %v287_v60  ;;  %v321_v12 = vrot.slane %v320_v61, 2 }
  0x47   : > { %v328_v13 = vsub.f32 %v1155_v31, %v270_v50  ;;  %v296_v14 = vrot.slane %v295_v62, 1  ;;  %v329_v15 = vsub.f32 %v1158_v32, %v261_v48  ;;  %v349_v16 = vmul.f32 1.442695, %v325_v63 }
  0x48   : > { %v305_v17 = vrot.slane %v304_v0, 1  ;;  %v330_v18 = vsub.f32 %v1161_v33, %v270_v50  ;;  %v351_v19 = vmul.f32 1.442695, %v326_v1  ;;  %v313_v28 = vmax.f32 %v311_v59, %v312_v5 }
  0x49   : > { %v331_v20 = vsub.f32 %v1172_v38, %v279_v2  ;;  %v353_v30 = vmul.f32 1.442695, %v327_v9  ;;  %v322_v21 = vmax.f32 %v320_v61, %v321_v12  ;;  %v332_v22 = vsub.f32 %v1178_v40, %v288_v10 }
  0x4a   : > { %v355_v29 = vmul.f32 1.442695, %v328_v13  ;;  %v297_v23 = vmax.f32 %v295_v62, %v296_v14  ;;  %v333_v24 = vsub.f32 %v1175_v39, %v279_v2  ;;  %818 = vpow2.f32 %v349_v16 }
  0x4b   : > { %v357_v31 = vmul.f32 1.442695, %v329_v15  ;;  %v306_v25 = vmax.f32 %v304_v0, %v305_v17  ;;  %v334_v32 = vsub.f32 %v1181_v41, %v288_v10  ;;  %820 = vpow2.f32 %v351_v19 }
  0x4c   : > { %v359_v26 = vmul.f32 1.442695, %v330_v18  ;;  %v314_v33 = vrot.slane %v313_v28, 1  ;;  %v335_v27 = vsub.f32 %v1184_v42, %v279_v2  ;;  %822 = vpow2.f32 %v353_v30 }
  0x4d   : > { %v361_v38 = vmul.f32 1.442695, %v331_v20  ;;  %v323_v34 = vrot.slane %v322_v21, 1  ;;  %v336_v35 = vsub.f32 %v1187_v44, %v288_v10  ;;  %824 = vpow2.f32 %v355_v29 }
  0x4e   : > { %v363_v40 = vmul.f32 1.442695, %v332_v22  ;;  %v337_v36 = vsub.f32 %v1198_v51, %v297_v23  ;;  %826 = vpow2.f32 %v357_v31  ;;  %v365_v39 = vmul.f32 1.442695, %v333_v24 }
  0x4f   : > { %v338_v37 = vsub.f32 %v1204_v54, %v306_v25  ;;  %828 = vpow2.f32 %v359_v26  ;;  %v367_v41 = vmul.f32 1.442695, %v334_v32  ;;  %v315_v43 = vmax.f32 %v313_v28, %v314_v33 }
  0x50   : > { %v339_v45 = vsub.f32 %v1201_v52, %v297_v23  ;;  %830 = vpow2.f32 %v361_v38  ;;  %v369_v42 = vmul.f32 1.442695, %v335_v27  ;;  %v324_v46 = vmax.f32 %v322_v21, %v323_v34 }
  0x51   : > { %v340_v47 = vsub.f32 %v1207_v55, %v306_v25  ;;  %832 = vpow2.f32 %v363_v40  ;;  %v371_v44 = vmul.f32 1.442695, %v336_v35  ;;  %v341_v48 = vsub.f32 %v1210_v56, %v297_v23 }
  0x52   : > { %834 = vpow2.f32 %v365_v39  ;;  %v373_v51 = vmul.f32 1.442695, %v337_v36  ;;  %v342_v49 = vsub.f32 %v1213_v58, %v306_v25  ;;  %v375_v54 = vmul.f32 1.442695, %v338_v37 }
  0x53   : > { %836 = vpow2.f32 %v367_v41  ;;  %v343_v50 = vsub.f32 %v1224_v3, %v315_v43  ;;  %v377_v53 = vmul.f32 1.442695, %v339_v45  ;;  %v344_v52 = vsub.f32 %v1230_v6, %v324_v46 }
  0x54   : > { %838 = vpow2.f32 %v369_v42  ;;  %v379_v57 = vmul.f32 1.442695, %v340_v47  ;;  %v345_v55 = vsub.f32 %v1227_v4, %v315_v43  ;;  %v381_v59 = vmul.f32 1.442695, %v341_v48 }
  0x55   : > { %840 = vpow2.f32 %v371_v44  ;;  %v346_v56 = vsub.f32 %v1233_v7, %v324_v46  ;;  %v383_v58 = vmul.f32 1.442695, %v342_v49  ;;  %v347_v3 = vsub.f32 %v1236_v8, %v315_v43 }
  0x56   : > { %842 = vpow2.f32 %v373_v51  ;;  %v385_v62 = vmul.f32 1.442695, %v343_v50  ;;  %v348_v6 = vsub.f32 %v1239_v11, %v324_v46  ;;  %v387_v4 = vmul.f32 1.442695, %v344_v52 }
  0x57   : > { %v1270_v60 = vpop.eup %818  ;;  %844 = vpow2.f32 %v375_v54  ;;  %v389_v1 = vmul.f32 1.442695, %v345_v55  ;;  %v391_v7 = vmul.f32 1.442695, %v346_v56  ;;  %v393_v8 = vmul.f32 1.442695, %v347_v3 }
  0x58   : > { %v1273_v61 = vpop.eup %820  ;;  %846 = vpow2.f32 %v377_v53  ;;  %v395_v10 = vmul.f32 1.442695, %v348_v6 }
  0x59   : > { %v1276_v63 = vpop.eup %822  ;;  %848 = vpow2.f32 %v379_v57 }
  0x5a   : > { %v1279_v0 = vpop.eup %824  ;;  %850 = vpow2.f32 %v381_v59  ;;  %v397_v21 = vadd.f32 %v1276_v63, %v1270_v60 }
  0x5b   : > { %v1281_v2 = vpop.eup %826  ;;  %852 = vpow2.f32 %v383_v58  ;;  %v406_v23 = vadd.f32 %v1279_v0, %v1273_v61 }
  0x5c   : > { %v1283_v5 = vpop.eup %828  ;;  %854 = vpow2.f32 %v385_v62  ;;  %v398_v29 = vsel %vm253_vm0, %v1281_v2, 0.0 }
  0x5d   : > { %v1285_v9 = vpop.eup %830  ;;  %856 = vpow2.f32 %v387_v4  ;;  %v407_v31 = vsel %vm253_vm0, %v1283_v5, 0.0  ;;  %v399_v38 = vadd.f32 %v398_v29, %v397_v21 }
  0x5e   : > { %v1287_v12 = vpop.eup %832  ;;  %858 = vpow2.f32 %v389_v1  ;;  %v408_v36 = vadd.f32 %v407_v31, %v406_v23 }
  0x5f   : > { %v1289_v11 = vpop.eup %834  ;;  %860 = vpow2.f32 %v391_v7  ;;  %v400_v44 = vrot.slane %v399_v38, 4 }
  0x60   : > { %v1291_v13 = vpop.eup %836  ;;  %862 = vpow2.f32 %v393_v8  ;;  %v415_v25 = vadd.f32 %v1289_v11, %v1285_v9  ;;  %v409_v49 = vrot.slane %v408_v36, 4 }
  0x61   : > { %v1293_v14 = vpop.eup %838  ;;  %864 = vpow2.f32 %v395_v10  ;;  %v424_v33 = vadd.f32 %v1291_v13, %v1287_v12  ;;  %v401_v55 = vadd.f32 %v400_v44, %v399_v38 }
  0x62   : > { %v1295_v15 = vpop.eup %840  ;;  %v416_v26 = vsel %vm253_vm0, %v1293_v14, 0.0  ;;  %v410_v56 = vadd.f32 %v409_v49, %v408_v36 }
  0x63   : > { %v1297_v16 = vpop.eup %842  ;;  %v425_v34 = vsel %vm253_vm0, %v1295_v15, 0.0  ;;  %v417_v41 = vadd.f32 %v416_v26, %v415_v25  ;;  %v402_v1 = vrot.slane %v401_v55, 2 }
  0x64   : > { %v1299_v17 = vpop.eup %844  ;;  %v426_v42 = vadd.f32 %v425_v34, %v424_v33  ;;  %v411_v8 = vrot.slane %v410_v56, 2 }
  0x65   : > { %v1301_v18 = vpop.eup %846  ;;  %v418_v50 = vrot.slane %v417_v41, 4  ;;  %v403_v25 = vadd.f32 %v402_v1, %v401_v55 }
  0x66   : > { %v1303_v19 = vpop.eup %848  ;;  %v433_v35 = vadd.f32 %v1301_v18, %v1297_v16  ;;  %v427_v52 = vrot.slane %v426_v42, 4  ;;  %v412_v33 = vadd.f32 %v411_v8, %v410_v56 }
  0x67   : > { %v1305_v28 = vpop.eup %850  ;;  %v442_v37 = vadd.f32 %v1303_v19, %v1299_v17  ;;  %v419_v3 = vadd.f32 %v418_v50, %v417_v41 }
  0x68   : > { %v1307_v20 = vpop.eup %852  ;;  %v434_v39 = vsel %vm253_vm0, %v1305_v28, 0.0  ;;  %v428_v6 = vadd.f32 %v427_v52, %v426_v42 }
  0x69   : > { %v1309_v30 = vpop.eup %854  ;;  %v443_v43 = vsel %vm253_vm0, %v1307_v20, 0.0  ;;  %v435_v48 = vadd.f32 %v434_v39, %v433_v35  ;;  %v420_v21 = vrot.slane %v419_v3, 2 }
  0x6a   : > { %v1313_v22 = vpop.eup %856  ;;  %v444_v54 = vadd.f32 %v443_v43, %v442_v37  ;;  %v429_v23 = vrot.slane %v428_v6, 2  ;;  %v404_v37 = vrot.slane %v403_v25, 1  ;;  %v413_v43 = vrot.slane %v412_v33, 1 }
  0x6b   : > { %v1319_v24 = vpop.eup %858  ;;  %v436_v59 = vrot.slane %v435_v48, 4  ;;  %v421_v38 = vadd.f32 %v420_v21, %v419_v3 }
  0x6c   : > { %v1325_v32 = vpop.eup %860  ;;  %v451_v45 = vadd.f32 %v1319_v24, %v1309_v30  ;;  %v445_v58 = vrot.slane %v444_v54, 4  ;;  %v430_v36 = vadd.f32 %v429_v23, %v428_v6  ;;  %v414_v49 = vadd.f32 %v413_v43, %v412_v33 }
  0x6d   : > { %v1331_v27 = vpop.eup %862  ;;  %v460_v47 = vadd.f32 %v1325_v32, %v1313_v22  ;;  %v437_v7 = vadd.f32 %v436_v59, %v435_v48  ;;  %v422_v42 = vrot.slane %v421_v38, 1  ;;  %v405_v48 = vadd.f32 %v404_v37, %v403_v25 }
  0x6e   : > { %v1337_v40 = vpop.eup %864  ;;  %v452_v46 = vsel %vm253_vm0, %v1331_v27, 0.0  ;;  %v446_v10 = vadd.f32 %v445_v58, %v444_v54 }
  0x6f   : > { %v461_v51 = vsel %vm253_vm0, %v1337_v40, 0.0  ;;  %v453_v53 = vadd.f32 %v452_v46, %v451_v45  ;;  %v438_v26 = vrot.slane %v437_v7, 2  ;;  %v423_v50 = vadd.f32 %v422_v42, %v421_v38 }
  0x70   : > { %v462_v57 = vadd.f32 %v461_v51, %v460_v47  ;;  %v447_v34 = vrot.slane %v446_v10, 2  ;;  %v431_v47 = vrot.slane %v430_v36, 1  ;;  %866 = vrcp.f32 %v405_v48 }
  0x71   : > { %v454_v62 = vrot.slane %v453_v53, 4  ;;  %v439_v41 = vadd.f32 %v438_v26, %v437_v7  ;;  %868 = vrcp.f32 %v414_v49 }
  0x72   : > { %v463_v4 = vrot.slane %v462_v57, 4  ;;  %v448_v45 = vadd.f32 %v447_v34, %v446_v10  ;;  %v432_v52 = vadd.f32 %v431_v47, %v430_v36  ;;  %870 = vrcp.f32 %v423_v50 }
  0x73   : > { %v455_v29 = vadd.f32 %v454_v62, %v453_v53  ;;  %v440_v51 = vrot.slane %v439_v41, 1 }
  0x74   : > { %v464_v31 = vadd.f32 %v463_v4, %v462_v57  ;;  %v449_v54 = vrot.slane %v448_v45, 1  ;;  %872 = vrcp.f32 %v432_v52 }
  0x75   : > { %v456_v35 = vrot.slane %v455_v29, 2  ;;  %v441_v55 = vadd.f32 %v440_v51, %v439_v41 }
  0x76   : > { %v465_v39 = vrot.slane %v464_v31, 2  ;;  %v450_v59 = vadd.f32 %v449_v54, %v448_v45 }
  0x77   : > { %v457_v46 = vadd.f32 %v456_v35, %v455_v29  ;;  %874 = vrcp.f32 %v441_v55 }
  0x78   : > { %v466_v44 = vadd.f32 %v465_v39, %v464_v31  ;;  %876 = vrcp.f32 %v450_v59 }
  0x79   : > { %v458_v53 = vrot.slane %v457_v46, 1 }
  0x7a   : > { %v467_v57 = vrot.slane %v466_v44, 1 }
  0x7b   : > { %v459_v56 = vadd.f32 %v458_v53, %v457_v46 }
  0x7c   : > { %v468_v58 = vadd.f32 %v467_v57, %v466_v44 }
  0x7d   : > { %878 = vrcp.f32 %v459_v56 }
  0x7e   : > { %880 = vrcp.f32 %v468_v58 }
  0xb0   : > { %v475_v3 = vpop.permute.xlu0 %474  ;;  %v485_v62 = vpop.permute.xlu1 %484 }
  0xb1   : > { %v487_v6 = vmul.f32 %v1270_v60, %v475_v3  ;;  %v488_v4 = vmul.f32 %v1273_v61, %v475_v3  ;;  %v491_v1 = vmul.f32 %v1281_v2, %v485_v62  ;;  %v492_v7 = vmul.f32 %v1283_v5, %v485_v62 }
  0xb2   : > { %v493_v8 = vmul.f32 %v1285_v9, %v475_v3  ;;  %v494_v10 = vmul.f32 %v1287_v12, %v475_v3  ;;  %v497_v21 = vmul.f32 %v1293_v14, %v485_v62  ;;  %v498_v29 = vmul.f32 %v1295_v15, %v485_v62 }
  0xb3   : > { %v499_v23 = vmul.f32 %v1297_v16, %v475_v3  ;;  %v500_v31 = vmul.f32 %v1299_v17, %v475_v3  ;;  %v503_v60 = vmul.f32 %v1305_v28, %v485_v62  ;;  %v504_v61 = vmul.f32 %v1307_v20, %v485_v62  ;;  %v1373_v28 = vpop.eup %866 }
  0xb4   : > { %v480_v25 = vpop.permute.xlu0 %479  ;;  %v505_v2 = vmul.f32 %v1309_v30, %v475_v3  ;;  %v506_v5 = vmul.f32 %v1313_v22, %v475_v3  ;;  %v509_v9 = vmul.f32 %v1331_v27, %v485_v62  ;;  %v510_v12 = vmul.f32 %v1337_v40, %v485_v62  ;;  %v1379_v26 = vpop.eup %868 }
  0xb5   : > { %v489_v14 = vmul.f32 %v1276_v63, %v480_v25  ;;  %v490_v15 = vmul.f32 %v1279_v0, %v480_v25  ;;  %v495_v16 = vmul.f32 %v1289_v11, %v480_v25  ;;  %v496_v17 = vmul.f32 %v1291_v13, %v480_v25  ;;  %v1383_v33 = vpop.eup %870 }
  0xb6   : > { %v501_v20 = vmul.f32 %v1301_v18, %v480_v25  ;;  %v502_v30 = vmul.f32 %v1303_v19, %v480_v25  ;;  %v507_v22 = vmul.f32 %v1319_v24, %v480_v25  ;;  %v508_v27 = vmul.f32 %v1325_v32, %v480_v25  ;;  %v1387_v38 = vpop.eup %872 }
  0xb7   : > { %v511_v40 = vadd.f32 %v489_v14, %v487_v6  ;;  %v512_v63 = vsel %vm253_vm0, %v491_v1, 0.0  ;;  %v520_v0 = vadd.f32 %v490_v15, %v488_v4  ;;  %v521_v11 = vsel %vm253_vm0, %v492_v7, 0.0  ;;  %v1390_v39 = vpop.eup %874 }
  0xb8   : > { %v529_v13 = vadd.f32 %v495_v16, %v493_v8  ;;  %v530_v34 = vsel %vm253_vm0, %v497_v21, 0.0  ;;  %v538_v18 = vadd.f32 %v496_v17, %v494_v10  ;;  %v539_v19 = vsel %vm253_vm0, %v498_v29, 0.0  ;;  %v877_v42 = vpop.eup %876 }
  0xb9   : > { %v513_v24 = vadd.f32 %v512_v63, %v511_v40  ;;  %v522_v32 = vadd.f32 %v521_v11, %v520_v0  ;;  %v547_v35 = vadd.f32 %v501_v20, %v499_v23  ;;  %v548_v36 = vsel %vm253_vm0, %v503_v60, 0.0  ;;  %v1393_v51 = vpop.eup %878 }
  0xba   : > { %v531_v37 = vadd.f32 %v530_v34, %v529_v13  ;;  %v540_v41 = vadd.f32 %v539_v19, %v538_v18  ;;  %v556_v43 = vadd.f32 %v502_v30, %v500_v31  ;;  %v557_v45 = vsel %vm253_vm0, %v504_v61, 0.0  ;;  %v1396_v52 = vpop.eup %880 }
  0xbb   : > { %v514_v46 = vrot.slane %v513_v24, 4  ;;  %v523_v47 = vrot.slane %v522_v32, 4  ;;  %v549_v44 = vadd.f32 %v548_v36, %v547_v35  ;;  %v565_v48 = vadd.f32 %v507_v22, %v505_v2 }
  0xbc   : > { %v532_v49 = vrot.slane %v531_v37, 4  ;;  %v541_v54 = vrot.slane %v540_v41, 4  ;;  %v558_v50 = vadd.f32 %v557_v45, %v556_v43  ;;  %v566_v53 = vsel %vm253_vm0, %v509_v9, 0.0 }
  0xbd   : > { %v515_v57 = vadd.f32 %v514_v46, %v513_v24  ;;  %v524_v55 = vadd.f32 %v523_v47, %v522_v32  ;;  %v550_v59 = vrot.slane %v549_v44, 4  ;;  %v567_v56 = vadd.f32 %v566_v53, %v565_v48 }
  0xbe   : > { %v533_v58 = vadd.f32 %v532_v49, %v531_v37  ;;  %v542_v3 = vadd.f32 %v541_v54, %v540_v41  ;;  %v559_v62 = vrot.slane %v558_v50, 4  ;;  %v574_v6 = vadd.f32 %v508_v27, %v506_v5 }
  0xbf   : > { %v516_v4 = vrot.slane %v515_v57, 2  ;;  %v525_v1 = vrot.slane %v524_v55, 2  ;;  %v551_v7 = vadd.f32 %v550_v59, %v549_v44  ;;  %v568_v8 = vrot.slane %v567_v56, 4 }
  0xc0   : > { %v534_v10 = vrot.slane %v533_v58, 2  ;;  %v543_v21 = vrot.slane %v542_v3, 2  ;;  %v560_v29 = vadd.f32 %v559_v62, %v558_v50  ;;  %v575_v23 = vsel %vm253_vm0, %v510_v12, 0.0 }
  0xc1   : > { %v517_v31 = vadd.f32 %v516_v4, %v515_v57  ;;  %v526_v60 = vadd.f32 %v525_v1, %v524_v55  ;;  %v552_v61 = vrot.slane %v551_v7, 2  ;;  %v569_v25 = vadd.f32 %v568_v8, %v567_v56 }
  0xc2   : > { %v535_v2 = vadd.f32 %v534_v10, %v533_v58  ;;  %v544_v9 = vadd.f32 %v543_v21, %v542_v3  ;;  %v561_v14 = vrot.slane %v560_v29, 2  ;;  %v576_v15 = vadd.f32 %v575_v23, %v574_v6 }
  0xc3   : > { %v518_v16 = vrot.slane %v517_v31, 1  ;;  %v527_v17 = vrot.slane %v526_v60, 1  ;;  %v553_v5 = vadd.f32 %v552_v61, %v551_v7  ;;  %v570_v20 = vrot.slane %v569_v25, 2 }
  0xc4   : > { %v536_v30 = vrot.slane %v535_v2, 1  ;;  %v545_v22 = vrot.slane %v544_v9, 1  ;;  %v562_v27 = vadd.f32 %v561_v14, %v560_v29  ;;  %v577_v40 = vrot.slane %v576_v15, 4 }
  0xc5   : > { %v519_v63 = vadd.f32 %v518_v16, %v517_v31  ;;  %v528_v0 = vadd.f32 %v527_v17, %v526_v60  ;;  %v554_v11 = vrot.slane %v553_v5, 1  ;;  %v571_v12 = vadd.f32 %v570_v20, %v569_v25 }
  0xc6   : > { %v537_v13 = vadd.f32 %v536_v30, %v535_v2  ;;  %v546_v34 = vadd.f32 %v545_v22, %v544_v9  ;;  %v563_v18 = vrot.slane %v562_v27, 1  ;;  %v578_v19 = vadd.f32 %v577_v40, %v576_v15 }
  0xc7   : > { %v555_v24 = vadd.f32 %v554_v11, %v553_v5  ;;  %v572_v32 = vrot.slane %v571_v12, 1  ;;  %v584_v35 = vmul.f32 %v1373_v28, %v519_v63  ;;  %v586_v36 = vmul.f32 %v1379_v26, %v528_v0 }
  0xc8   : > { %v564_v37 = vadd.f32 %v563_v18, %v562_v27  ;;  %v579_v41 = vrot.slane %v578_v19, 2  ;;  %v588_v43 = vmul.f32 %v1383_v33, %v537_v13  ;;  %v590_v45 = vmul.f32 %v1387_v38, %v546_v34 }
  0xc9   : > { %v592_v46 = vmul.f32 %v1390_v39, %v555_v24  ;;  %v573_v47 = vadd.f32 %v572_v32, %v571_v12  ;;  %v607_v54 = vcombine.low %v584_v35, %v586_v36 }
  0xca   : > { %v580_v44 = vadd.f32 %v579_v41, %v578_v19  ;;  %v594_v48 = vmul.f32 %v877_v42, %v564_v37  ;;  %v608_v49 = vcombine.low %v588_v43, %v590_v45 }
  0xcb   : > { %v596_v53 = vmul.f32 %v1393_v51, %v573_v47 }
  0xcc   : > { %v581_v28 = vrot.slane %v580_v44, 1  ;;  %v609_v26 = vcombine.low %v592_v46, %v594_v48  ;;  %v611_v50 = vrot.slane %v608_v49, 7 }
  0xce   : > { %v582_v33 = vadd.f32 %v581_v28, %v580_v44  ;;  %v613_v38 = vsel %vm612_vm1, %v611_v50, %v607_v54  ;;  %v616_v57 = vrot.slane %v609_v26, 6 }
  0xcf   : > { %v615_v39 = vsel %vm614_vm2, %v611_v50, %v613_v38 }
  0xd0   : > { %v598_v55 = vmul.f32 %v1396_v52, %v582_v33  ;;  %v618_v42 = vsel %vm617_vm3, %v616_v57, %v615_v39 }
  0xd1   : > { %v620_v56 = vsel %vm619_vm4, %v616_v57, %v618_v42 }
  0xd2   : > { %v610_v59 = vcombine.low %v596_v53, %v598_v55 }
  0xd4   : > { %v621_v58 = vrot.slane %v610_v59, 5 }
  0xd6   : > { %v623_v3 = vsel %vm622_vm5, %v621_v58, %v620_v56 }
  0xd7   : > { %v625_v51 = vsel %vm624_vm6, %v621_v58, %v623_v3 }
  0xd8   : > { %627 = vst [vmem:[%s225_s18] sm:$0xff] %v625_v51 }
  0xd9   : > { %895 = shalt.err (!%p892_p7)
}
  0xda   : > { %s896_s4 = scalar_lea.hbm %s1412_s22, 128  ;;  %s900_s6 = scalar_lea.hbm %s1461_s2, 1024 }
  0xdb   : > { %p897_p10 = scmp.ne.s32.totalorder %s1412_s22, %s896_s4  ;;  %p901_p13 = scmp.lt.s32.totalorder %s1412_s22, %s1461_s2 }
  0xdc   : > { %p902_p0 = scmp.lt.s32.totalorder %s900_s6, %s896_s4 }
  0xdd   : > { %p898_p11 = pnand %p897_p10, %p1053_p8 }
  0xde   : > { %p903_p1 = por %p902_p0, %p901_p13 }
  0xdf   : > { %p899_p12 = pneg %p898_p11 }
  0xe1   : > { %p904_p2 = pnand %p903_p1, %p899_p12 }
  0xe3   : > { %907 = shalt.err (!%p904_p2)
}
  0xe4   : > { %744 = dma.vmem_to_hbm [thread:$0]  (%p1053_p8), %s646_s12, 128, %s1412_s22, %s629_s25  }
  0xe5 PF: > { %p750_p3 = scmp.ge.s32.totalorder %s974_s16, 2  ;;  %s657_s17 = sand.u32 1, %s946_s9  }
  0xe6   : > { %s658_s18 = scalar_lea.sflag [#allocation4], %s657_s17 }
  0xe7   : > { %p747_p4 = pnand %p750_p3, %p1057_p9 }
  0xe9   : > { %p748_p5 = pneg %p747_p4 }
  0xeb   : > { %941 = dma.done.wait (%p748_p5), %s658_s18, 128  }
  0xec   : > { %943 = vsyncadd (%p748_p5), %s658_s18, 4294967168  ;;  %s15_s16 = sadd.s32 1, %s974_s16   ;;  %s1465_s9 = smov %s950_s10 }
  0xed   : > { %p12_p6 = scmp.ge.s32.totalorder %s15_s16, 10   ;;  %s1466_s10 = smov %s954_s11 }
  0xee   : > { %s1467_s11 = smov %s1065_s28  ;;  %s1468_s12 = smov %s966_s14 }
  0xef   : > { %s1469_s13 = smov %s970_s15  ;;  %s1470_s14 = smov %s1473_s19 }
  0xf0   : > { %s1471_s15 = smov %s1477_s20  ;;  %14 = sbr.rel (!%p12_p6) target bundleno = 5 (0x5), region = 91 }
  0xf5   :  { %663 = vsyncpa [#allocation4], 1 }
  0xf6   :  { %665 = vsyncpa [#allocation4 + $0x1], 1 }

</bundles_post_ra>
